<compile_context>
chip_gen: v6e
topology: v6e:2x2x1
jax: 0.10.0
libtpu: 0.0.40
codegen_flags: <defaults>
</compile_context>

<pallas_src>
import functools

import jax
import jax.numpy as jnp
from jax.experimental import pallas as pl
from jax.experimental.pallas import tpu as pltpu

H1 = 128        # fc1 out features
H2 = 256        # fc2 out features
TN_MAX = 10240  # max fc3 output-feature tile width (multiple of 128)


def _round_up(v, m):
    return (v + m - 1) // m * m


def _tiling(out_dim, tn_max=TN_MAX):
    """Pick (tile_width, padded_out_dim) for the fc3 stream.

    Single tile if it fits under tn_max; otherwise the smallest EVEN tile
    count whose (128-aligned) tile width is <= tn_max, so the two v7x
    TensorCores split the 'parallel' axis evenly and per-step overhead is
    amortized over few, large tiles.
    """
    base = _round_up(out_dim, 128)
    if base <= tn_max:
        return base, base
    tiles = 2
    while True:
        tn = _round_up(-(-base // tiles), 128)
        if tn <= tn_max:
            return tn, tn * tiles
        tiles += 2


def _head_kernel(x_ref, w1_ref, b1_ref, w2_ref, b2_ref, h2_ref):
    """h2 = relu(relu(x@W1+b1) @ W2 + b2), emitted once in bf16."""
    # fc1: K=3 is a degenerate MXU shape -> three VPU broadcast FMAs (f32).
    x = x_ref[...]                                  # (B, 3) f32
    w1 = w1_ref[...]                                # (3, H1) f32
    h1 = (x[:, 0:1] * w1[0:1, :]
          + x[:, 1:2] * w1[1:2, :]
          + x[:, 2:3] * w1[2:3, :]) + b1_ref[...]
    h1 = jnp.maximum(h1, 0.0)

    # fc2: bf16 MXU matmul, f32 accumulation; bias + ReLU in f32.
    h2 = jnp.dot(h1.astype(jnp.bfloat16), w2_ref[...],
                 preferred_element_type=jnp.float32) + b2_ref[...]
    h2_ref[...] = jnp.maximum(h2, 0.0).astype(jnp.bfloat16)


def _fc3_kernel(h2_ref, w3_ref, b3_ref, o_ref):
    """One TN-wide output tile: o = h2 @ w3_tile + b3_tile (f32 accumulate)."""
    o_ref[...] = jnp.dot(h2_ref[...], w3_ref[...],
                         preferred_element_type=jnp.float32) + b3_ref[...]


@functools.partial(jax.jit, static_argnames=("n", "tn", "padded"))
def _forward(x, w1, b1, w2, b2, w3p, b3p, *, n, tn, padded):
    B = x.shape[0]
    out_dim = n * n
    num_tiles = padded // tn

    # Tiny one-shot head kernel: everything fits in VMEM as a single block.
    h2 = pl.pallas_call(
        _head_kernel,
        out_shape=jax.ShapeDtypeStruct((B, H2), jnp.bfloat16),
    )(x, w1, b1, w2, b2)

    # Grid-invariant operand: full-shape block, constant block index
    # (fetched once, not re-DMA'd per step).
    const2d = lambda shape: pl.BlockSpec(shape, lambda j: (0, 0))

    out = pl.pallas_call(
        _fc3_kernel,
        out_shape=jax.ShapeDtypeStruct((B, padded), jnp.float32),
        grid=(num_tiles,),
        in_specs=[
            const2d((B, H2)),                          # h2 (bf16)
            pl.BlockSpec((H2, tn), lambda j: (0, j)),  # fc3 weight tile (bf16)
            pl.BlockSpec((1, tn), lambda j: (0, j)),   # fc3 bias tile (f32)
        ],
        out_specs=pl.BlockSpec((B, tn), lambda j: (0, j)),
        compiler_params=pltpu.CompilerParams(
            dimension_semantics=("parallel",),         # v7x: shard tiles across TCs
            vmem_limit_bytes=32 * 1024 * 1024,
        ),
    )(h2, w3p, b3p)

    if padded == out_dim:
        return out.reshape(-1, n, n)
    # Exact PyTorch semantics: drop the pad, view(-1, N, N).  Consumers that
    # can take the padded flat buffer should use `out` directly instead.
    return out[:, :out_dim].reshape(-1, n, n)


def noise_regression_forward(x, prepared_params, n):
    """x: (B, 3) float32 -> (B, n, n) float32."""
    tn, padded = _tiling(n * n)
    w1, b1, w2, b2, w3p, b3p = prepared_params
    assert w3p.shape[1] == padded and b3p.shape[1] == padded, (
        "prepared params were padded with a different tiling than the kernel")
    return _forward(x, w1, b1, w2, b2, w3p, b3p, n=n, tn=tn, padded=padded)


def init_params(key, n):
    """f32 params with nn.Linear(3,128)/(128,256)/(256,n*n) shapes, stored (in,out)."""
    k1, k2, k3, k4, k5, k6 = jax.random.split(key, 6)
    w1 = jax.random.normal(k1, (3, H1), jnp.float32) * (1.0 / jnp.sqrt(3.0))
    b1 = jax.random.normal(k2, (1, H1), jnp.float32) * 0.01
    w2 = jax.random.normal(k3, (H1, H2), jnp.float32) * (1.0 / jnp.sqrt(H1))
    b2 = jax.random.normal(k4, (1, H2), jnp.float32) * 0.01
    w3 = jax.random.normal(k5, (H2, n * n), jnp.float32) * (1.0 / jnp.sqrt(H2))
    b3 = jax.random.normal(k6, (1, n * n), jnp.float32) * 0.01
    return (w1, b1, w2, b2, w3, b3)


def prepare_params(params, n):
    """One-time prep: keep w1/b1 f32 (fc1 is VPU FMAs), cast w2/w3 to bf16
    (halves the dominant fc3 HBM stream), and zero-pad fc3 out-features to a
    lane-dense multiple of the tile width chosen by _tiling (same function the
    kernel uses, so padding and grid always agree)."""
    w1, b1, w2, b2, w3, b3 = params
    out_dim = n * n
    _, padded = _tiling(out_dim)
    pad = padded - out_dim
    w3p = jnp.pad(w3, ((0, 0), (0, pad))).astype(jnp.bfloat16)
    b3p = jnp.pad(b3, ((0, 0), (0, pad)))
    return (w1, b1, w2.astype(jnp.bfloat16), b2, w3p, b3p)


def _reference(x, prepared, n):
    """Pure-JAX reference using the same bf16-weight / f32-accumulate math."""
    w1, b1, w2, b2, w3p, b3p = prepared
    out_dim = n * n
    h1 = jnp.maximum(x @ w1 + b1, 0.0)
    h2 = jnp.maximum(
        jnp.dot(h1.astype(jnp.bfloat16), w2,
                preferred_element_type=jnp.float32) + b2, 0.0)
    ref = (jnp.dot(h2.astype(jnp.bfloat16), w3p,
                   preferred_element_type=jnp.float32) + b3p)
    return ref[:, :out_dim].reshape(-1, n, n)


if __name__ == "__main__":
    # Small test configs; the production module uses N = 200
    # (fc3 out = 40000 -> 4 parallel tiles of 10112, padded to 40448).
    # The math and code paths are identical.
    B = 4
    key = jax.random.PRNGKey(0)
    kx, kp = jax.random.split(key)
    x = jax.random.normal(kx, (B, 3), jnp.float32)

    # N_TEST=16 exercises the single-tile path; N_TEST=120 exercises the
    # multi-tile grid + output padding/slice path (2 tiles of 7296).
    for n_test in (16, 120):
        params = init_params(kp, n_test)
        prepared = prepare_params(params, n_test)

        out = noise_regression_forward(x, prepared, n_test)
        out = jax.block_until_ready(out)

        ref = _reference(x, prepared, n_test)

        assert out.shape == (B, n_test, n_test), out.shape
        assert jnp.allclose(out, ref, atol=2e-2, rtol=2e-2), (
            f"mismatch vs reference at N={n_test}")

    print("KERNEL_OK")
</pallas_src>

<mosaic_0001>
module attributes {stable_mosaic.version = 11 : i64} {
  func.func @_fc3_kernel(%arg0: i32, %arg1: memref<4x256xbf16, #tpu.memory_space<vmem>>, %arg2: memref<256x256xbf16, #tpu.memory_space<vmem>>, %arg3: memref<1x256xf32, #tpu.memory_space<vmem>>, %arg4: memref<4x256xf32, #tpu.memory_space<vmem>>) attributes {dimension_semantics = [#tpu.dimension_semantics<parallel>], iteration_bounds = array<i64: 1>, scalar_prefetch = 0 : i64, scratch_operands = 0 : i64, tpu.core_type = #tpu.core_type<tc>, window_params = [{pipeline_mode = #tpu.pipeline_mode<synchronous>, transform_indices = @transform_0, window_bounds = array<i64: 4, 256>}, {transform_indices = @transform_1, window_bounds = array<i64: 256, 256>}, {transform_indices = @transform_2, window_bounds = array<i64: 1, 256>}, {transform_indices = @transform_3, window_bounds = array<i64: 4, 256>}]} {
    %c0 = arith.constant 0 : index
    %c0_0 = arith.constant 0 : index
    %0 = vector.load %arg1[%c0, %c0_0] : memref<4x256xbf16, #tpu.memory_space<vmem>>, vector<4x256xbf16>
    %c0_1 = arith.constant 0 : index
    %c0_2 = arith.constant 0 : index
    %1 = vector.load %arg2[%c0_1, %c0_2] : memref<256x256xbf16, #tpu.memory_space<vmem>>, vector<256x256xbf16>
    %cst = arith.constant dense<0.000000e+00> : vector<4x256xf32>
    %2 = tpu.matmul %0, %1, %cst {dimension_numbers = #tpu.dot_dimension_numbers<[1], [0], [0], [1], [0, 0, 1, 1], [], []>} : vector<4x256xbf16>, vector<256x256xbf16>, vector<4x256xf32> -> vector<4x256xf32>
    %c0_3 = arith.constant 0 : index
    %c0_4 = arith.constant 0 : index
    %3 = vector.load %arg3[%c0_3, %c0_4] : memref<1x256xf32, #tpu.memory_space<vmem>>, vector<1x256xf32>
    %4 = vector.broadcast %3 : vector<1x256xf32> to vector<4x256xf32>
    %5 = arith.addf %2, %4 : vector<4x256xf32>
    %c0_5 = arith.constant 0 : index
    %c0_6 = arith.constant 0 : index
    %6 = vector.load %arg4[%c0_5, %c0_6] : memref<4x256xf32, #tpu.memory_space<vmem>>, vector<4x256xf32>
    tpu.vector_store %arg4[%c0_5, %c0_6], %5 {strides = array<i32>} : memref<4x256xf32, #tpu.memory_space<vmem>>, vector<4x256xf32>,
    return
  }
  func.func @transform_0(%arg0: i32) -> (i32, i32) {
    %c0_i32 = arith.constant 0 : i32
    %c0_i32_0 = arith.constant 0 : i32
    %c0_i32_1 = arith.constant 0 : i32
    return %c0_i32, %c0_i32_0 : i32, i32
  }
  func.func @transform_1(%arg0: i32) -> (i32, i32) {
    %c0_i32 = arith.constant 0 : i32
    %c0_i32_0 = arith.constant 0 : i32
    return %c0_i32, %arg0 : i32, i32
  }
  func.func @transform_2(%arg0: i32) -> (i32, i32) {
    %c0_i32 = arith.constant 0 : i32
    %c0_i32_0 = arith.constant 0 : i32
    return %c0_i32, %arg0 : i32, i32
  }
  func.func @transform_3(%arg0: i32) -> (i32, i32) {
    %c0_i32 = arith.constant 0 : i32
    %c0_i32_0 = arith.constant 0 : i32
    return %c0_i32, %arg0 : i32, i32
  }
}

module attributes {stable_mosaic.version = 11 : i64} {
  func.func @_head_kernel(%arg0: memref<4x3xf32, #tpu.memory_space<vmem>>, %arg1: memref<3x128xf32, #tpu.memory_space<vmem>>, %arg2: memref<1x128xf32, #tpu.memory_space<vmem>>, %arg3: memref<128x256xbf16, #tpu.memory_space<vmem>>, %arg4: memref<1x256xf32, #tpu.memory_space<vmem>>, %arg5: memref<4x256xbf16, #tpu.memory_space<vmem>>) attributes {dimension_semantics = [], scalar_prefetch = 0 : i64, scratch_operands = 0 : i64, tpu.core_type = #tpu.core_type<tc>} {
    %c0 = arith.constant 0 : index
    %c0_0 = arith.constant 0 : index
    %0 = vector.load %arg0[%c0, %c0_0] : memref<4x3xf32, #tpu.memory_space<vmem>>, vector<4x3xf32>
    %c0_1 = arith.constant 0 : index
    %c0_2 = arith.constant 0 : index
    %1 = vector.load %arg1[%c0_1, %c0_2] : memref<3x128xf32, #tpu.memory_space<vmem>>, vector<3x128xf32>
    %2 = vector.extract_strided_slice %0 {offsets = [0, 0], sizes = [4, 1], strides = [1, 1]} : vector<4x3xf32> to vector<4x1xf32>
    %3 = vector.extract_strided_slice %1 {offsets = [0, 0], sizes = [1, 128], strides = [1, 1]} : vector<3x128xf32> to vector<1x128xf32>
    %4 = vector.broadcast %2 : vector<4x1xf32> to vector<4x128xf32>
    %5 = vector.broadcast %3 : vector<1x128xf32> to vector<4x128xf32>
    %6 = arith.mulf %4, %5 : vector<4x128xf32>
    %7 = vector.extract_strided_slice %0 {offsets = [0, 1], sizes = [4, 1], strides = [1, 1]} : vector<4x3xf32> to vector<4x1xf32>
    %8 = vector.extract_strided_slice %1 {offsets = [1, 0], sizes = [1, 128], strides = [1, 1]} : vector<3x128xf32> to vector<1x128xf32>
    %9 = vector.broadcast %7 : vector<4x1xf32> to vector<4x128xf32>
    %10 = vector.broadcast %8 : vector<1x128xf32> to vector<4x128xf32>
    %11 = arith.mulf %9, %10 : vector<4x128xf32>
    %12 = arith.addf %6, %11 : vector<4x128xf32>
    %13 = vector.extract_strided_slice %0 {offsets = [0, 2], sizes = [4, 1], strides = [1, 1]} : vector<4x3xf32> to vector<4x1xf32>
    %14 = vector.extract_strided_slice %1 {offsets = [2, 0], sizes = [1, 128], strides = [1, 1]} : vector<3x128xf32> to vector<1x128xf32>
    %15 = vector.broadcast %13 : vector<4x1xf32> to vector<4x128xf32>
    %16 = vector.broadcast %14 : vector<1x128xf32> to vector<4x128xf32>
    %17 = arith.mulf %15, %16 : vector<4x128xf32>
    %18 = arith.addf %12, %17 : vector<4x128xf32>
    %c0_3 = arith.constant 0 : index
    %c0_4 = arith.constant 0 : index
    %19 = vector.load %arg2[%c0_3, %c0_4] : memref<1x128xf32, #tpu.memory_space<vmem>>, vector<1x128xf32>
    %20 = vector.broadcast %19 : vector<1x128xf32> to vector<4x128xf32>
    %21 = arith.addf %18, %20 : vector<4x128xf32>
    %cst = arith.constant 0.000000e+00 : f32
    %22 = vector.broadcast %cst : f32 to vector<4x128xf32>
    %23 = arith.maximumf %21, %22 : vector<4x128xf32>
    %24 = arith.truncf %23 : vector<4x128xf32> to vector<4x128xbf16>
    %c0_5 = arith.constant 0 : index
    %c0_6 = arith.constant 0 : index
    %25 = vector.load %arg3[%c0_5, %c0_6] : memref<128x256xbf16, #tpu.memory_space<vmem>>, vector<128x256xbf16>
    %cst_7 = arith.constant dense<0.000000e+00> : vector<4x256xf32>
    %26 = tpu.matmul %24, %25, %cst_7 {dimension_numbers = #tpu.dot_dimension_numbers<[1], [0], [0], [1], [0, 0, 1, 1], [], []>} : vector<4x128xbf16>, vector<128x256xbf16>, vector<4x256xf32> -> vector<4x256xf32>
    %c0_8 = arith.constant 0 : index
    %c0_9 = arith.constant 0 : index
    %27 = vector.load %arg4[%c0_8, %c0_9] : memref<1x256xf32, #tpu.memory_space<vmem>>, vector<1x256xf32>
    %28 = vector.broadcast %27 : vector<1x256xf32> to vector<4x256xf32>
    %29 = arith.addf %26, %28 : vector<4x256xf32>
    %cst_10 = arith.constant 0.000000e+00 : f32
    %30 = vector.broadcast %cst_10 : f32 to vector<4x256xf32>
    %31 = arith.maximumf %29, %30 : vector<4x256xf32>
    %32 = arith.truncf %31 : vector<4x256xf32> to vector<4x256xbf16>
    %c0_11 = arith.constant 0 : index
    %c0_12 = arith.constant 0 : index
    %33 = vector.load %arg5[%c0_11, %c0_12] : memref<4x256xbf16, #tpu.memory_space<vmem>>, vector<4x256xbf16>
    tpu.vector_store %arg5[%c0_11, %c0_12], %32 {strides = array<i32>} : memref<4x256xbf16, #tpu.memory_space<vmem>>, vector<4x256xbf16>,
    return
  }
}

</mosaic_0001>

<bundles_post_ra>
// kernel: _forward.3
= control target key start
LH: loop header
LB: loop body
LE: loop exit
PB: predicated region body
PF: predicated region fallthrough
CT: control target
= control target key end

     0   :  { %8 = vsyncpa [#allocation3], 0  ;;  %s401_s12 = smov [#allocation2]   ;;  %s436_s0 = inlined_call_operand.vmem [shape: bf16[4,256], index: 0, kind: input, shape index: {}]   ;;  %s437_s1 = inlined_call_operand.hbm [shape: bf16[256,256], index: 1, kind: input, shape index: {}]   ;;  %s438_s2 = inlined_call_operand.vmem [shape: f32[1,256], index: 2, kind: input, shape index: {}]   ;;  %s439_s3 = inlined_call_operand.vmem [shape: f32[4,256], index: 3, kind: output, shape index: {}]  }
   0x1   :  { %s16_s13 = sshll.u32 %s401_s12, 4  ;;  %s17_s13 = int_to_ptr.vmem [resolvable:$true] %s16_s13 }
   0x2   :  { %s387_s14 = scalar_lea.vmem %s17_s13, 4096  ;;  %p392_p1 = scmp.lt.s32.totalorder %s17_s13, %s17_s13 }
   0x3   :  { %p388_p0 = scmp.ne.s32.totalorder %s17_s13, %s387_s14  ;;  %p393_p2 = scmp.lt.s32.totalorder %s387_s14, %s387_s14 }
   0x5   :  { %p394_p3 = por %p393_p2, %p392_p1 }
   0x7   :  { %p395_p4 = pnand %p394_p3, %p388_p0 }
   0x9   :  { %398 = shalt.err (!%p395_p4)
}
   0xa   :  { %s402_s15 = smov 128   ;;  %s403_s16 = smov 8  }
   0xb   :  { %22 = dma.hbm_to_vmem [thread:$0]  %s437_s1, 4096, %s17_s13, [#allocation3], %s402_s15, %s402_s15, %s403_s16  }
   0xc   :  { %399 = dma.done.wait [#allocation3], 4096  }
   0xd   :  { %400 = vsyncadd [#allocation3], 4294963200  ;;  %v331_v0 = vld [vmem:[#allocation2 + $0x74] ss:$8 sps:$4 sm:$0xff]   ;;  %v333_v1 = vld [vmem:[#allocation2 + $0x70] ss:$8 sps:$4 sm:$0xff]   ;;  %v63_v34 = vlaneseq }
   0xe   :  { %244 = vmatprep.subr.bf16.mxu0 %v331_v0  ;;  %v334_v2 = vld [vmem:[#allocation2 + $0x64] ss:$8 sps:$4 sm:$0xff]   ;;  %v336_v3 = vld [vmem:[#allocation2 + $0x60] ss:$8 sps:$4 sm:$0xff]   ;;  %v337_v4 = vld [vmem:[#allocation2 + $0x54] ss:$8 sps:$4 sm:$0xff]  }
   0xf   :  { %245 = vmatpush1.bf16.msra.mxu0 %v333_v1  ;;  %v339_v5 = vld [vmem:[#allocation2 + $0x50] ss:$8 sps:$4 sm:$0xff]   ;;  %v340_v6 = vld [vmem:[#allocation2 + $0x44] ss:$8 sps:$4 sm:$0xff]   ;;  %v342_v7 = vld [vmem:[#allocation2 + $0x40] ss:$8 sps:$4 sm:$0xff]  }
  0x10   :  { %246 = vmatprep.subr.bf16.mxu0 %v334_v2  ;;  %v343_v8 = vld [vmem:[#allocation2 + $0x34] ss:$8 sps:$4 sm:$0xff]   ;;  %v345_v9 = vld [vmem:[#allocation2 + $0x30] ss:$8 sps:$4 sm:$0xff]   ;;  %v346_v10 = vld [vmem:[#allocation2 + $0x24] ss:$8 sps:$4 sm:$0xff]  }
  0x11   :  { %v348_v11 = vld [vmem:[#allocation2 + $0x20] ss:$8 sps:$4 sm:$0xff]   ;;  %v349_v12 = vld [vmem:[#allocation2 + $0x14] ss:$8 sps:$4 sm:$0xff]   ;;  %v351_v15 = vld [vmem:[#allocation2 + $0x10] ss:$8 sps:$4 sm:$0xff]  }
  0x12   :  { %v295_v13 = vld.sshfl [vmem:[%s436_s0] sm:$0x33 pattern:$0x76325410]  ;;  %v352_v16 = vld [vmem:[#allocation2 + $0x4] ss:$8 sps:$4 sm:$0xff]  }
  0x13   :  { %247 = vmatpush1.bf16.msra.mxu0 %v336_v3  ;;  %v81_v14 = vcombine.high %v295_v13, %v295_v13  ;;  %v354_v17 = vld [vmem:[#allocation2] ss:$8 sps:$4 sm:$0xff]   ;;  %v355_v18 = vld [vmem:[#allocation2 + $0xf4] ss:$8 sps:$4 sm:$0xff]   ;;  %v357_v19 = vld [vmem:[#allocation2 + $0xf0] ss:$8 sps:$4 sm:$0xff]  }
  0x14   :  { %248 = vmatprep.subr.bf16.mxu0 %v337_v4  ;;  %v358_v20 = vld [vmem:[#allocation2 + $0xe4] ss:$8 sps:$4 sm:$0xff]   ;;  %v360_v21 = vld [vmem:[#allocation2 + $0xe0] ss:$8 sps:$4 sm:$0xff]   ;;  %v361_v22 = vld [vmem:[#allocation2 + $0xd4] ss:$8 sps:$4 sm:$0xff]  }
  0x15   :  { %276 = vmatprep.mubr.bf16.mxu0 %v81_v14  ;;  %v363_v23 = vld [vmem:[#allocation2 + $0xd0] ss:$8 sps:$4 sm:$0xff]   ;;  %v364_v24 = vld [vmem:[#allocation2 + $0xc4] ss:$8 sps:$4 sm:$0xff]   ;;  %v366_v25 = vld [vmem:[#allocation2 + $0xc0] ss:$8 sps:$4 sm:$0xff]  }
  0x16   :  { %v367_v26 = vld [vmem:[#allocation2 + $0xb4] ss:$8 sps:$4 sm:$0xff]   ;;  %v369_v27 = vld [vmem:[#allocation2 + $0xb0] ss:$8 sps:$4 sm:$0xff]   ;;  %v370_v28 = vld [vmem:[#allocation2 + $0xa4] ss:$8 sps:$4 sm:$0xff]  }
  0x17   :  { %249 = vmatpush1.bf16.msra.mxu0 %v339_v5  ;;  %v372_v29 = vld [vmem:[#allocation2 + $0xa0] ss:$8 sps:$4 sm:$0xff]   ;;  %v373_v30 = vld [vmem:[#allocation2 + $0x94] ss:$8 sps:$4 sm:$0xff]   ;;  %v375_v31 = vld [vmem:[#allocation2 + $0x90] ss:$8 sps:$4 sm:$0xff]  }
  0x18   :  { %250 = vmatprep.subr.bf16.mxu0 %v340_v6  ;;  %v376_v32 = vld [vmem:[#allocation2 + $0x84] ss:$8 sps:$4 sm:$0xff]   ;;  %v378_v33 = vld [vmem:[#allocation2 + $0x80] ss:$8 sps:$4 sm:$0xff]   ;;  %v64_v35 = vshrl.u32 %v63_v34, 7 }
  0x19   :  { %v61_v38 = vld [vmem:[%s438_s2] sm:$0x3] }
  0x1a   :  { %v65_v36 = vsub.s32 0, %v64_v35  ;;  %v69_v37 = vsub.s32 1, %v64_v35 }
  0x1b   :  { %251 = vmatpush1.bf16.msra.mxu0 %v342_v7 }
  0x1c   :  { %252 = vmatprep.subr.bf16.mxu0 %v343_v8  ;;  %v66_v39 = vrot.slane %v61_v38, %v65_v36  ;;  %v70_v40 = vrot.slane %v61_v38, %v69_v37 }
  0x1f   :  { %253 = vmatpush1.bf16.msra.mxu0 %v345_v9 }
  0x20   :  { %254 = vmatprep.subr.bf16.mxu0 %v346_v10 }
  0x23   :  { %255 = vmatpush1.bf16.msra.mxu0 %v348_v11 }
  0x24   :  { %256 = vmatprep.subr.bf16.mxu0 %v349_v12 }
  0x27   :  { %257 = vmatpush1.bf16.msra.mxu0 %v351_v15 }
  0x28   :  { %258 = vmatprep.subr.bf16.mxu0 %v352_v16 }
  0x2b   :  { %259 = vmatpush1.bf16.msra.mxu0 %v354_v17 }
  0x2c   :  { %260 = vmatprep.subr.bf16.mxu0 %v355_v18 }
  0x2f   :  { %261 = vmatpush2.bf16.msra.mxu0 %v357_v19 }
  0x30   :  { %262 = vmatprep.subr.bf16.mxu0 %v358_v20 }
  0x33   :  { %263 = vmatpush2.bf16.msra.mxu0 %v360_v21 }
  0x34   :  { %264 = vmatprep.subr.bf16.mxu0 %v361_v22 }
  0x37   :  { %265 = vmatpush2.bf16.msra.mxu0 %v363_v23 }
  0x38   :  { %266 = vmatprep.subr.bf16.mxu0 %v364_v24 }
  0x3b   :  { %267 = vmatpush2.bf16.msra.mxu0 %v366_v25 }
  0x3c   :  { %268 = vmatprep.subr.bf16.mxu0 %v367_v26 }
  0x3f   :  { %269 = vmatpush2.bf16.msra.mxu0 %v369_v27 }
  0x40   :  { %270 = vmatprep.subr.bf16.mxu0 %v370_v28 }
  0x43   :  { %271 = vmatpush2.bf16.msra.mxu0 %v372_v29 }
  0x44   :  { %272 = vmatprep.subr.bf16.mxu0 %v373_v30 }
  0x47   :  { %273 = vmatpush2.bf16.msra.mxu0 %v375_v31 }
  0x48   :  { %274 = vmatprep.subr.bf16.mxu0 %v376_v32 }
  0x4b   :  { %275 = vmatpush2.bf16.msra.mxu0 %v378_v33 }
  0x4e   :  { %277 = vmatmul.mubr.bf16.vlgmr.msra.gmra.mxu0 %v295_v13 }
 0x10e   :  { %v278_v41 = vpop.f32.mrf.mxu0 }
 0x10f   :  { %v279_v43 = vadd.f32 %v278_v41, %v66_v39 }
 0x110   :  { %v280_v42 = vpop.f32.mrf.mxu0 }
 0x111   :  { %v281_v44 = vadd.f32 %v280_v42, %v70_v40 }
 0x112   :  { %v282_v45 = vpop.f32.mrf.mxu0 }
 0x113   :  { %v287_v46 = vcombine.low %v279_v43, %v281_v44 }
 0x114   :  { %v283_v47 = vpop.f32.mrf.mxu0 }
 0x115   :  { %289 = vst [vmem:[%s439_s3] sm:$0xff] %v287_v46 }
 0x116   :  { %294 = vsyncpa [#allocation3], 1 }

// kernel: _forward.2
= control target key start
LH: loop header
LB: loop body
LE: loop exit
PB: predicated region body
PF: predicated region fallthrough
CT: control target
= control target key end

     0   :  { %10 = vsyncpa [#allocation3], 0  ;;  %s446_s0 = inlined_call_operand.hbm [shape: f32[4,3], index: 0, kind: input, shape index: {}]   ;;  %s447_s1 = inlined_call_operand.hbm [shape: f32[3,128], index: 1, kind: input, shape index: {}]   ;;  %s448_s2 = inlined_call_operand.vmem [shape: f32[1,128], index: 2, kind: input, shape index: {}]   ;;  %s449_s3 = inlined_call_operand.hbm [shape: bf16[128,256], index: 3, kind: input, shape index: {}]   ;;  %s450_s4 = inlined_call_operand.vmem [shape: f32[1,256], index: 4, kind: input, shape index: {}]   ;;  %s451_s5 = inlined_call_operand.vmem [shape: bf16[4,256], index: 5, kind: output, shape index: {}]  }
   0x1   :  { %11 = vsyncpa [#allocation5], 0  ;;  %s390_s18 = smov [#allocation4]   ;;  %s391_s20 = smov [#allocation2]  }
   0x2   :  { %s28_s19 = sshll.u32 %s390_s18, 4  ;;  %s18_s21 = sshll.u32 %s391_s20, 4  ;;  %s29_s19 = int_to_ptr.vmem [resolvable:$true] %s28_s19  ;;  %s19_s21 = int_to_ptr.vmem [resolvable:$true] %s18_s21 }
   0x3   :  { %s334_s22 = scalar_lea.vmem %s29_s19, 64  ;;  %p339_p1 = scmp.lt.s32.totalorder %s29_s19, %s29_s19 }
   0x4   :  { %p335_p0 = scmp.ne.s32.totalorder %s29_s19, %s334_s22  ;;  %p340_p2 = scmp.lt.s32.totalorder %s334_s22, %s334_s22 }
   0x6   :  { %p341_p3 = por %p340_p2, %p339_p1 }
   0x8   :  { %p342_p4 = pnand %p341_p3, %p335_p0 }
   0xa   :  { %345 = shalt.err (!%p342_p4)
}
   0xb   :  { %31 = dma.hbm_to_vmem [thread:$0]  %s447_s1, 64, %s29_s19, [#allocation5]  }
   0xc   :  { %s354_s25 = scalar_lea.vmem %s19_s21, 64  ;;  %p359_p6 = scmp.lt.s32.totalorder %s19_s21, %s19_s21 }
   0xd   :  { %p355_p5 = scmp.ne.s32.totalorder %s19_s21, %s354_s25  ;;  %p360_p7 = scmp.lt.s32.totalorder %s354_s25, %s354_s25 }
   0xf   :  { %p361_p8 = por %p360_p7, %p359_p6 }
  0x11   :  { %p362_p9 = pnand %p361_p8, %p355_p5 }
  0x13   :  { %365 = shalt.err (!%p362_p9)
}
  0x14   :  { %21 = dma.hbm_to_vmem [thread:$0]  %s446_s0, 64, %s19_s21, [#allocation3]  }
  0x15   :  { %s392_s28 = smov [#allocation6]  }
  0x16   :  { %s39_s29 = sshll.u32 %s392_s28, 4  ;;  %s40_s29 = int_to_ptr.vmem [resolvable:$true] %s39_s29 }
  0x17   :  { %s374_s30 = scalar_lea.vmem %s40_s29, 2048  ;;  %p379_p11 = scmp.lt.s32.totalorder %s40_s29, %s40_s29 }
  0x18   :  { %p375_p10 = scmp.ne.s32.totalorder %s40_s29, %s374_s30  ;;  %p380_p12 = scmp.lt.s32.totalorder %s374_s30, %s374_s30 }
  0x1a   :  { %p381_p13 = por %p380_p12, %p379_p11 }
  0x1c   :  { %p382_p0 = pnand %p381_p13, %p375_p10 }
  0x1e   :  { %385 = shalt.err (!%p382_p0)
}
  0x1f   :  { %s393_s1 = smov 128   ;;  %s394_s6 = smov 8  }
  0x20   :  { %45 = dma.hbm_to_vmem [thread:$0]  %s449_s3, 2048, %s40_s29, [#allocation5], %s393_s1, %s393_s1, %s394_s6  }
  0x21   :  { %386 = dma.done.wait [#allocation3], 64  }
  0x22   :  { %387 = vsyncadd [#allocation3], 4294967232 }
  0x23   :  { %388 = dma.done.wait [#allocation5], 2112  }
  0x24   :  { %389 = vsyncadd [#allocation5], 4294965184  ;;  %v395_v0 = vmov 0   ;;  %v396_v1 = vmov 2   ;;  %v58_v2 = vld [vmem:[#allocation2] sm:$0xf]  ;;  %v65_v20 = vlaneseq }
  0x25   :  { %298 = vset.pattern.permute.xlu0 %v395_v0  ;;  %300 = vset.pattern.permute.xlu1 %v396_v1  ;;  %v302_v3 = vld [vmem:[#allocation6 + $0x74] ss:$8 sps:$4 sm:$0xff]   ;;  %v304_v4 = vld [vmem:[#allocation6 + $0x70] ss:$8 sps:$4 sm:$0xff]   ;;  %v305_v5 = vld [vmem:[#allocation6 + $0x64] ss:$8 sps:$4 sm:$0xff]  }
  0x26   :  { %240 = vmatprep.mubr.bf16.mxu0 %v395_v0  ;;  %62 = vperm.xlu0 %298, %v58_v2   ;;  %v307_v6 = vld [vmem:[#allocation6 + $0x60] ss:$8 sps:$4 sm:$0xff]   ;;  %v397_v7 = vmov 1   ;;  %v308_v8 = vld [vmem:[#allocation6 + $0x54] ss:$8 sps:$4 sm:$0xff]   ;;  %v66_v21 = vshrl.u32 %v65_v20, 7 }
  0x27   :  { %81 = vperm.xlu1 %300, %v58_v2   ;;  %208 = vmatprep.subr.bf16.mxu0 %v302_v3  ;;  %v310_v9 = vld [vmem:[#allocation6 + $0x50] ss:$8 sps:$4 sm:$0xff]   ;;  %v311_v10 = vld [vmem:[#allocation6 + $0x44] ss:$8 sps:$4 sm:$0xff]   ;;  %v313_v11 = vld [vmem:[#allocation6 + $0x40] ss:$8 sps:$4 sm:$0xff]  }
  0x28   :  { %209 = vmatpush1.bf16.msra.mxu0 %v304_v4  ;;  %v314_v12 = vld [vmem:[#allocation6 + $0x34] ss:$8 sps:$4 sm:$0xff]   ;;  %v316_v13 = vld [vmem:[#allocation6 + $0x30] ss:$8 sps:$4 sm:$0xff]   ;;  %v317_v14 = vld [vmem:[#allocation6 + $0x24] ss:$8 sps:$4 sm:$0xff]  }
  0x29   :  { %210 = vmatprep.subr.bf16.mxu0 %v305_v5  ;;  %v319_v15 = vld [vmem:[#allocation6 + $0x20] ss:$8 sps:$4 sm:$0xff]   ;;  %v320_v16 = vld [vmem:[#allocation6 + $0x14] ss:$8 sps:$4 sm:$0xff]   ;;  %v322_v17 = vld [vmem:[#allocation6 + $0x10] ss:$8 sps:$4 sm:$0xff]  }
  0x2a   :  { %299 = vset.pattern.permute.xlu0 %v397_v7  ;;  %v323_v18 = vld [vmem:[#allocation6 + $0x4] ss:$8 sps:$4 sm:$0xff]   ;;  %v325_v19 = vld [vmem:[#allocation6] ss:$8 sps:$4 sm:$0xff]   ;;  %v67_v22 = vsub.s32 0, %v66_v21  ;;  %v76_v23 = vsub.s32 1, %v66_v21 }
  0x2b   :  { %71 = vperm.xlu0 %299, %v58_v2   ;;  %v86_v24 = vsub.s32 2, %v66_v21  ;;  %v59_v25 = vld [vmem:[#allocation4] sm:$0x7]  ;;  %v271_v36 = vld [vmem:[%s448_s2] ss:$0 sm:$0xff] }
  0x2c   :  { %211 = vmatpush1.bf16.msra.mxu0 %v307_v6  ;;  %v68_v27 = vrot.slane %v59_v25, %v67_v22  ;;  %v77_v28 = vrot.slane %v59_v25, %v76_v23  ;;  %v116_v41 = vld [vmem:[%s450_s4] sm:$0x3] }
  0x2d   :  { %212 = vmatprep.subr.bf16.mxu0 %v308_v8  ;;  %v87_v29 = vrot.slane %v59_v25, %v86_v24  ;;  %v121_v42 = vrot.slane %v116_v41, %v67_v22  ;;  %v125_v43 = vrot.slane %v116_v41, %v76_v23 }
  0x2f   :  { %301 = vset.pattern.permute.xlu0 %v396_v1 }
  0x30   :  { %213 = vmatpush1.bf16.msra.mxu0 %v310_v9 }
  0x31   :  { %214 = vmatprep.subr.bf16.mxu0 %v311_v10 }
  0x34   :  { %215 = vmatpush1.bf16.msra.mxu0 %v313_v11 }
  0x35   :  { %216 = vmatprep.subr.bf16.mxu0 %v314_v12 }
  0x38   :  { %217 = vmatpush1.bf16.msra.mxu0 %v316_v13 }
  0x39   :  { %218 = vmatprep.subr.bf16.mxu0 %v317_v14 }
  0x3c   :  { %219 = vmatpush1.bf16.msra.mxu0 %v319_v15 }
  0x3d   :  { %220 = vmatprep.subr.bf16.mxu0 %v320_v16 }
  0x40   :  { %221 = vmatpush1.bf16.msra.mxu0 %v322_v17 }
  0x41   :  { %222 = vmatprep.subr.bf16.mxu0 %v323_v18 }
  0x44   :  { %223 = vmatpush1.bf16.msra.mxu0 %v325_v19 }
  0xa1   :  { %v63_v26 = vpop.permute.xlu0 %62 }
  0xa2   :  { %v82_v30 = vpop.permute.xlu1 %81  ;;  %v69_v32 = vmul.f32 %v68_v27, %v63_v26 }
  0xa3   :  { %v88_v34 = vmul.f32 %v87_v29, %v82_v30 }
  0xa6   :  { %v72_v31 = vpop.permute.xlu0 %71 }
  0xa7   :  { %v78_v33 = vmul.f32 %v77_v28, %v72_v31 }
  0xa9   :  { %v79_v35 = vadd.f32 %v78_v33, %v69_v32 }
  0xab   :  { %v89_v37 = vadd.f32 %v88_v34, %v79_v35 }
  0xad   :  { %v97_v38 = vadd.f32 %v271_v36, %v89_v37 }
  0xaf   :  { %v98_v39 = vmax.f32 %v97_v38, 0.0 }
  0xb1   :  { %v99_v40 = vpack.c.bf16 %v98_v39, %v98_v39 }
  0xb3   :  { %241 = vmatmul.mubr.bf16.vlgmr.msra.gmra.mxu0 %v99_v40 }
 0x173   :  { %v242_v44 = vpop.f32.mrf.mxu0 }
 0x174   :  { %v243_v45 = vadd.f32 %v242_v44, %v121_v42 }
 0x175   :  { %v244_v46 = vpop.f32.mrf.mxu0 }
 0x176   :  { %v245_v47 = vadd.f32 %v244_v46, %v125_v43  ;;  %v249_v49 = vmax.f32 %v243_v45, 0.0 }
 0x177   :  { %v246_v48 = vpop.f32.mrf.mxu0 }
 0x178   :  { %v250_v50 = vmax.f32 %v245_v47, 0.0 }
 0x179   :  { %v247_v51 = vpop.f32.mrf.mxu0 }
 0x17a   :  { %v288_v52 = vpack.c.bf16 %v250_v50, %v249_v49 }
 0x17c   :  { %289 = vst.sshfl [vmem:[%s451_s5] sm:$0x33 pattern:$0x76325410] %v288_v52 }
 0x17d   :  { %269 = vsyncpa [#allocation3], 1 }
 0x17e   :  { %270 = vsyncpa [#allocation5], 1 }

</bundles_post_ra>
